<compile_context>
chip_gen: v7x
topology: tpu7x:2x2x1
jax: 0.10.0
libtpu: 0.0.40
codegen_flags: <defaults>
</compile_context>

<pallas_src>
import functools

import jax
import jax.numpy as jnp
from jax import lax
from jax.experimental import pallas as pl
from jax.experimental.pallas import tpu as pltpu


def _whiten_gram_kernel(x_ref, mask_ref, metric_ref, xtx_acc, sum_acc, *,
                        n_frames, num_channels, tile_n, need_mask):
    """Grid axis 0 (reduction, "arbitrary") iterates over frame tiles.

    x_ref      : (tile_n, C) block of frames, input dtype (f32 or bf16)
    mask_ref   : (C, C) f32 per-group block-diagonal mask (constant block index)
    metric_ref : (1, 1) f32 output, written on the last grid step
    xtx_acc    : (C, C) f32 VMEM accumulator for X^T X
    sum_acc    : (1, C) f32 VMEM accumulator for per-channel sums
    """
    t = pl.program_id(0)
    num_tiles = pl.num_programs(0)

    @pl.when(t == 0)
    def _init():
        xtx_acc[...] = jnp.zeros_like(xtx_acc)
        sum_acc[...] = jnp.zeros_like(sum_acc)

    x = x_ref[...]                                        # (tile_n, C)
    if need_mask:  # static (trace-time) branch: only emitted when N % tile_n != 0
        row = lax.broadcasted_iota(jnp.int32, x.shape, 0)
        valid = (t * tile_n + row) < n_frames
        x = jnp.where(valid, x, jnp.zeros_like(x))

    # Per-channel sum, accumulated in f32.
    sum_acc[...] += jnp.sum(x.astype(jnp.float32), axis=0, keepdims=True)
    # X^T X over this tile: contract the frame axis directly (no explicit
    # transpose); MXU matmul in the input dtype, f32 accumulation.
    xtx_acc[...] += lax.dot_general(
        x, x, (((0,), (0,)), ((), ())), preferred_element_type=jnp.float32)

    @pl.when(t == num_tiles - 1)
    def _finalize():
        n = jnp.float32(n_frames)
        s = sum_acc[...]                                  # (1, C)
        # covar = sum_i (x_i - mu)(x_i - mu)^T = XtX - (s s^T) / N
        # (XtX and s are accumulated in f32; see correctness note below).
        outer = lax.dot_general(
            s, s, (((0,), (0,)), ((), ())), preferred_element_type=jnp.float32)
        covar = xtx_acc[...] - outer * (1.0 / n)          # (C, C)

        r = lax.broadcasted_iota(jnp.int32, (num_channels, num_channels), 0)
        c = lax.broadcasted_iota(jnp.int32, (num_channels, num_channels), 1)
        trace = jnp.sum(jnp.where(r == c, covar, 0.0))
        mean_diag = trace / jnp.float32(num_channels)     # torch: _diag(covar).mean()

        blk_sq = jnp.sum(covar * covar * mask_ref[...])   # per-group block-diag blocks only
        covarsq_mean = blk_sq / jnp.float32(num_channels)  # torch: /(G * cpg)

        metric = covarsq_mean / (mean_diag * mean_diag + 1e-20)
        metric_ref[...] = jnp.reshape(metric, (1, 1))


def whitening_metric_pallas(x: jax.Array, num_groups: int, *,
                            tile_n: int = 1024) -> jax.Array:
    """Pallas equivalent of `_whitening_metric(x, num_groups)` -> scalar f32."""
    assert x.dtype != jnp.float16
    num_channels = x.shape[-1]
    assert num_channels % num_groups == 0
    cpg = num_channels // num_groups

    x2 = x.reshape(-1, num_channels)                      # natural (N, C) layout
    # Keep bf16 as bf16 (halves HBM traffic); anything else goes to f32.
    if x2.dtype not in (jnp.dtype(jnp.float32), jnp.dtype(jnp.bfloat16)):
        x2 = x2.astype(jnp.float32)
    n_frames = x2.shape[0]

    # Tile of frames: multiple of 8 (sublane), capped at tile_n; VMEM use is
    # ~2*tn*C*itemsize (double-buffered input) + (C^2 + C)*4 scratch + C^2*4 mask.
    if n_frames >= 8:
        tn = min(tile_n, (n_frames // 8) * 8)
    else:
        tn = n_frames
    num_tiles = pl.cdiv(n_frames, tn)
    need_mask = (n_frames % tn) != 0

    # Per-group block-diagonal mask (tiny, fetched into VMEM once since its
    # block index never changes).
    gid = jnp.arange(num_channels, dtype=jnp.int32) // cpg
    group_mask = (gid[:, None] == gid[None, :]).astype(jnp.float32)

    kernel = functools.partial(
        _whiten_gram_kernel,
        n_frames=n_frames, num_channels=num_channels,
        tile_n=tn, need_mask=need_mask)

    cost = pl.CostEstimate(
        flops=2 * n_frames * num_channels * num_channels,
        transcendentals=0,
        bytes_accessed=n_frames * num_channels * x2.dtype.itemsize
        + num_channels * num_channels * 4 + 4)

    metric = pl.pallas_call(
        kernel,
        out_shape=jax.ShapeDtypeStruct((1, 1), jnp.float32),
        grid=(num_tiles,),
        in_specs=[
            pl.BlockSpec((tn, num_channels), lambda t: (t, 0)),
            pl.BlockSpec((num_channels, num_channels), lambda t: (0, 0)),
        ],
        out_specs=pl.BlockSpec((1, 1), lambda t: (0, 0)),
        scratch_shapes=[
            pltpu.VMEM((num_channels, num_channels), jnp.float32),
            pltpu.VMEM((1, num_channels), jnp.float32),
        ],
        compiler_params=pltpu.CompilerParams(
            dimension_semantics=("arbitrary",)),
        cost_estimate=cost,
    )(x2, group_mask)
    # Correctness note: the XtX - s s^T / N formulation is accumulated in f32;
    # for data with means large relative to the std this can lose precision vs.
    # two-pass centering (acceptable for this regularizer's use).
    return metric[0, 0]


class Whiten:
    """JAX/Pallas analogue of the PyTorch Whiten module's forward pass."""

    def __init__(self, num_groups: int, whitening_limit: float, prob, grad_scale: float):
        assert num_groups >= 1
        assert whitening_limit >= 1
        assert grad_scale >= 0
        self.num_groups = num_groups
        self.whitening_limit = whitening_limit
        if isinstance(prob, float):
            assert 0 < prob <= 1
            self.prob = prob
        else:
            self.min_prob, self.max_prob = prob
            assert 0 < self.min_prob < self.max_prob <= 1
            self.prob = self.max_prob
        self.grad_scale = grad_scale

    def forward(self, x: jax.Array) -> jax.Array:
        # Forward semantics: return x unmodified.  The whitening metric (the
        # module's real compute) is computed by the Pallas kernel and used to
        # adapt `prob`, mirroring the torch module's host-side update (this
        # float() sync happens only on the prob-adaptation path, not per step).
        # TODO(synk): WhiteningPenaltyFunction's custom backward (gradient
        # penalty) is a training-time autograd hook and is not part of forward.
        if hasattr(self, "min_prob"):
            metric = whitening_metric_pallas(x, self.num_groups)
            self.prob = (self.max_prob if float(metric) > self.whitening_limit
                         else self.min_prob)
        return x


def _whitening_metric_ref(x, num_groups):
    """Pure-JAX reference mirroring the PyTorch math (correctness check)."""
    x = x.astype(jnp.float32).reshape(-1, x.shape[-1])
    n, c = x.shape
    cpg = c // num_groups
    xg = jnp.transpose(x.reshape(n, num_groups, cpg), (1, 0, 2))
    xg = xg - xg.mean(axis=1, keepdims=True)
    covar = jnp.matmul(jnp.transpose(xg, (0, 2, 1)), xg)
    diag = jnp.diagonal(covar, axis1=1, axis2=2)
    mean_diag = diag.mean()
    covarsq = (covar ** 2).sum() / (num_groups * cpg)
    return covarsq / (mean_diag ** 2 + 1e-20)


if __name__ == "__main__":
    key = jax.random.PRNGKey(0)
    batch, seq, num_channels = 2, 8, 32     # x: (*, num_channels), channels-last
    num_groups = 4
    x = jax.random.normal(key, (batch, seq, num_channels), dtype=jnp.float32)

    whiten = Whiten(num_groups=num_groups, whitening_limit=2.0,
                    prob=(0.025, 0.25), grad_scale=0.02)

    y = jax.block_until_ready(whiten.forward(x))
    assert y.shape == x.shape and bool(jnp.all(y == x)), "forward must be identity"

    # f32 path, frame count divisible by the tile.
    metric = jax.block_until_ready(whitening_metric_pallas(x, num_groups))
    metric_ref = _whitening_metric_ref(x, num_groups)
    assert jnp.allclose(metric, metric_ref, rtol=1e-4, atol=1e-4), (metric, metric_ref)

    # Partial-last-tile path (n_frames=21 with tile_n=16 -> mask branch).
    x3 = jax.random.normal(jax.random.PRNGKey(1), (3, 7, num_channels), jnp.float32)
    m3 = jax.block_until_ready(whitening_metric_pallas(x3, num_groups, tile_n=16))
    m3_ref = _whitening_metric_ref(x3, num_groups)
    assert jnp.allclose(m3, m3_ref, rtol=1e-4, atol=1e-4), (m3, m3_ref)

    # bf16 input path (MXU bf16 operands, f32 accumulation) -- loose tolerance.
    m_bf = jax.block_until_ready(
        whitening_metric_pallas(x.astype(jnp.bfloat16), num_groups))
    assert jnp.allclose(m_bf, metric_ref, rtol=1e-1, atol=1e-1), (m_bf, metric_ref)

    print("KERNEL_OK")
</pallas_src>

<mosaic_0001>
module attributes {stable_mosaic.version = 11 : i64} {
  func.func @_whiten_gram_kernel(%arg0: i32, %arg1: memref<16x32xf32, #tpu.memory_space<vmem>>, %arg2: memref<32x32xf32, #tpu.memory_space<vmem>>, %arg3: memref<1x1xf32, #tpu.memory_space<vmem>>, %arg4: memref<32x32xf32, #tpu.memory_space<vmem>>, %arg5: memref<1x32xf32, #tpu.memory_space<vmem>>) attributes {dimension_semantics = [#tpu.dimension_semantics<arbitrary>], iteration_bounds = array<i64: 1>, scalar_prefetch = 0 : i64, scratch_operands = 2 : i64, tpu.core_type = #tpu.core_type<tc>, window_params = [{transform_indices = @transform_0, window_bounds = array<i64: 16, 32>}, {pipeline_mode = #tpu.pipeline_mode<synchronous>, transform_indices = @transform_1, window_bounds = array<i64: 32, 32>}, {pipeline_mode = #tpu.pipeline_mode<synchronous>, transform_indices = @transform_2, window_bounds = array<i64: 1, 1>}]} {
    %c0_i32 = arith.constant 0 : i32
    %0 = arith.cmpi eq, %arg0, %c0_i32 : i32
    %1 = arith.extui %0 : i1 to i32
    %c0_i32_0 = arith.constant 0 : i32
    %2 = arith.cmpi ne, %1, %c0_i32_0 : i32
    scf.if %2 {
      %cst_13 = arith.constant 0.000000e+00 : f32
      %16 = vector.broadcast %cst_13 : f32 to vector<32x32xf32>
      %c0_14 = arith.constant 0 : index
      %c0_15 = arith.constant 0 : index
      %17 = vector.load %arg4[%c0_14, %c0_15] : memref<32x32xf32, #tpu.memory_space<vmem>>, vector<32x32xf32>
      tpu.vector_store %arg4[%c0_14, %c0_15], %16 {strides = array<i32>} : memref<32x32xf32, #tpu.memory_space<vmem>>, vector<32x32xf32>,
      %cst_16 = arith.constant 0.000000e+00 : f32
      %18 = vector.broadcast %cst_16 : f32 to vector<1x32xf32>
      %c0_17 = arith.constant 0 : index
      %c0_18 = arith.constant 0 : index
      %19 = vector.load %arg5[%c0_17, %c0_18] : memref<1x32xf32, #tpu.memory_space<vmem>>, vector<1x32xf32>
      tpu.vector_store %arg5[%c0_17, %c0_18], %18 {strides = array<i32>} : memref<1x32xf32, #tpu.memory_space<vmem>>, vector<1x32xf32>,
    } else {
    }
    %c0 = arith.constant 0 : index
    %c0_1 = arith.constant 0 : index
    %3 = vector.load %arg1[%c0, %c0_1] : memref<16x32xf32, #tpu.memory_space<vmem>>, vector<16x32xf32>
    %c0_2 = arith.constant 0 : index
    %c0_3 = arith.constant 0 : index
    %4 = vector.load %arg5[%c0_2, %c0_3] : memref<1x32xf32, #tpu.memory_space<vmem>>, vector<1x32xf32>
    %cst = arith.constant dense<0.000000e+00> : vector<32xf32>
    %5 = vector.multi_reduction <add>, %3, %cst [0] : vector<16x32xf32> to vector<32xf32>
    %6 = vector.shape_cast %5 : vector<32xf32> to vector<1x32xf32>
    %7 = arith.addf %4, %6 : vector<1x32xf32>
    %c0_4 = arith.constant 0 : index
    %c0_5 = arith.constant 0 : index
    %8 = vector.load %arg5[%c0_4, %c0_5] : memref<1x32xf32, #tpu.memory_space<vmem>>, vector<1x32xf32>
    tpu.vector_store %arg5[%c0_4, %c0_5], %7 {strides = array<i32>} : memref<1x32xf32, #tpu.memory_space<vmem>>, vector<1x32xf32>,
    %c0_6 = arith.constant 0 : index
    %c0_7 = arith.constant 0 : index
    %9 = vector.load %arg4[%c0_6, %c0_7] : memref<32x32xf32, #tpu.memory_space<vmem>>, vector<32x32xf32>
    %cst_8 = arith.constant dense<0.000000e+00> : vector<32x32xf32>
    %10 = tpu.matmul %3, %3, %cst_8 {dimension_numbers = #tpu.dot_dimension_numbers<[0], [0], [1], [1], [0, 1, 1, 1], [], []>} : vector<16x32xf32>, vector<16x32xf32>, vector<32x32xf32> -> vector<32x32xf32>
    %11 = arith.addf %9, %10 : vector<32x32xf32>
    %c0_9 = arith.constant 0 : index
    %c0_10 = arith.constant 0 : index
    %12 = vector.load %arg4[%c0_9, %c0_10] : memref<32x32xf32, #tpu.memory_space<vmem>>, vector<32x32xf32>
    tpu.vector_store %arg4[%c0_9, %c0_10], %11 {strides = array<i32>} : memref<32x32xf32, #tpu.memory_space<vmem>>, vector<32x32xf32>,
    %c0_i32_11 = arith.constant 0 : i32
    %13 = arith.cmpi eq, %arg0, %c0_i32_11 : i32
    %14 = arith.extui %13 : i1 to i32
    %c0_i32_12 = arith.constant 0 : i32
    %15 = arith.cmpi ne, %14, %c0_i32_12 : i32
    scf.if %15 {
      %c0_13 = arith.constant 0 : index
      %c0_14 = arith.constant 0 : index
      %16 = vector.load %arg5[%c0_13, %c0_14] : memref<1x32xf32, #tpu.memory_space<vmem>>, vector<1x32xf32>
      %cst_15 = arith.constant dense<0.000000e+00> : vector<32x32xf32>
      %17 = tpu.matmul %16, %16, %cst_15 {dimension_numbers = #tpu.dot_dimension_numbers<[0], [0], [1], [1], [0, 1, 1, 1], [], []>} : vector<1x32xf32>, vector<1x32xf32>, vector<32x32xf32> -> vector<32x32xf32>
      %c0_16 = arith.constant 0 : index
      %c0_17 = arith.constant 0 : index
      %18 = vector.load %arg4[%c0_16, %c0_17] : memref<32x32xf32, #tpu.memory_space<vmem>>, vector<32x32xf32>
      %cst_18 = arith.constant 1.000000e+00 : f32
      %cst_19 = arith.constant 1.600000e+01 : f32
      %19 = arith.divf %cst_18, %cst_19 : f32
      %20 = vector.broadcast %19 : f32 to vector<32x32xf32>
      %21 = arith.mulf %17, %20 : vector<32x32xf32>
      %22 = arith.subf %18, %21 : vector<32x32xf32>
      %23 = tpu.iota {dimensions = array<i32: 0>} : vector<32x32xi32>
      %24 = tpu.iota {dimensions = array<i32: 1>} : vector<32x32xi32>
      %25 = arith.cmpi eq, %23, %24 : vector<32x32xi32>
      %cst_20 = arith.constant 0.000000e+00 : f32
      %26 = vector.broadcast %cst_20 : f32 to vector<32x32xf32>
      %27 = arith.select %25, %22, %26 : vector<32x32xi1>, vector<32x32xf32>
      %28 = vector.shape_cast %27 : vector<32x32xf32> to vector<1x32x32xf32>
      %cst_21 = arith.constant dense<0.000000e+00> : vector<1xf32>
      %29 = vector.multi_reduction <add>, %28, %cst_21 [1, 2] : vector<1x32x32xf32> to vector<1xf32>
      %30 = vector.shape_cast %29 : vector<1xf32> to vector<1x1x1xf32>
      %31 = vector.extract %30[0, 0, 0] : f32 from vector<1x1x1xf32>
      %cst_22 = arith.constant 3.200000e+01 : f32
      %32 = arith.divf %31, %cst_22 : f32
      %33 = arith.mulf %22, %22 : vector<32x32xf32>
      %c0_23 = arith.constant 0 : index
      %c0_24 = arith.constant 0 : index
      %34 = vector.load %arg2[%c0_23, %c0_24] : memref<32x32xf32, #tpu.memory_space<vmem>>, vector<32x32xf32>
      %35 = arith.mulf %33, %34 : vector<32x32xf32>
      %36 = vector.shape_cast %35 : vector<32x32xf32> to vector<1x32x32xf32>
      %cst_25 = arith.constant dense<0.000000e+00> : vector<1xf32>
      %37 = vector.multi_reduction <add>, %36, %cst_25 [1, 2] : vector<1x32x32xf32> to vector<1xf32>
      %38 = vector.shape_cast %37 : vector<1xf32> to vector<1x1x1xf32>
      %39 = vector.extract %38[0, 0, 0] : f32 from vector<1x1x1xf32>
      %cst_26 = arith.constant 3.200000e+01 : f32
      %40 = arith.divf %39, %cst_26 : f32
      %41 = arith.mulf %32, %32 : f32
      %cst_27 = arith.constant 9.99999968E-21 : f32
      %42 = arith.addf %41, %cst_27 : f32
      %43 = arith.divf %40, %42 : f32
      %44 = vector.broadcast %43 : f32 to vector<1x1xf32>
      %c0_28 = arith.constant 0 : index
      %c0_29 = arith.constant 0 : index
      %45 = vector.load %arg3[%c0_28, %c0_29] : memref<1x1xf32, #tpu.memory_space<vmem>>, vector<1x1xf32>
      tpu.vector_store %arg3[%c0_28, %c0_29], %44 {strides = array<i32>} : memref<1x1xf32, #tpu.memory_space<vmem>>, vector<1x1xf32>,
    } else {
    }
    return
  }
  func.func @transform_0(%arg0: i32) -> (i32, i32) {
    %c0_i32 = arith.constant 0 : i32
    %c0_i32_0 = arith.constant 0 : i32
    return %arg0, %c0_i32 : i32, i32
  }
  func.func @transform_1(%arg0: i32) -> (i32, i32) {
    %c0_i32 = arith.constant 0 : i32
    %c0_i32_0 = arith.constant 0 : i32
    %c0_i32_1 = arith.constant 0 : i32
    return %c0_i32, %c0_i32_0 : i32, i32
  }
  func.func @transform_2(%arg0: i32) -> (i32, i32) {
    %c0_i32 = arith.constant 0 : i32
    %c0_i32_0 = arith.constant 0 : i32
    %c0_i32_1 = arith.constant 0 : i32
    return %c0_i32, %c0_i32_0 : i32, i32
  }
}

</mosaic_0001>

<bundles_post_ra>
// kernel: tpu_custom_call.1
= control target key start
LH: loop header
LB: loop body
LE: loop exit
PB: predicated region body
PF: predicated region fallthrough
CT: control target
= control target key end

     0   :  { %7 = vsyncpa [#allocation5], 0  ;;  %s654_s0 = inlined_call_operand.hbm [shape: f32[16,32], index: 0, kind: input, shape index: {}]   ;;  %s655_s1 = inlined_call_operand.hbm [shape: f32[32,32], index: 1, kind: input, shape index: {}]   ;;  %s656_s2 = inlined_call_operand.hbm [shape: f32[1,1], index: 2, kind: output, shape index: {}]  }
   0x1   :  { %8 = vsyncpa [#allocation8], 0 }
   0x2   :  { %9 = vsyncpa [#allocation6], 0  ;;  %s577_s9 = smov [#allocation4]   ;;  %s505_s13 = scalar_lea.hbm %s654_s0, 256 }
   0x3   :  { %s15_s10 = sshll.u32 %s577_s9, 4  ;;  %p506_p0 = scmp.ne.s32.totalorder %s654_s0, %s505_s13  ;;  %s16_s10 = int_to_ptr.vmem [resolvable:$true] %s15_s10 }
   0x4   :  { %p509_p1 = scmp.lt.u32.totalorder %s505_s13, %s654_s0 }
   0x6   :  { %p511_p2 = pnand %p509_p1, %p506_p0 }
   0x8   :  { %514 = shalt.err (!%p511_p2)
}
   0x9   :  { %s515_s18 = scalar_lea.vmem %s16_s10, 256  ;;  %p520_p4 = scmp.lt.s32.totalorder %s16_s10, %s16_s10 }
   0xa   :  { %p516_p3 = scmp.ne.s32.totalorder %s16_s10, %s515_s18  ;;  %p521_p5 = scmp.lt.s32.totalorder %s515_s18, %s515_s18 }
   0xc   :  { %p522_p6 = por %p521_p5, %p520_p4 }
   0xe   :  { %p523_p7 = pnand %p522_p6, %p516_p3 }
  0x10   :  { %526 = shalt.err (!%p523_p7)
}
  0x11   :  { %s578_s19 = smov 128   ;;  %s579_s20 = smov 8  }
  0x12   :  { %21 = dma.hbm_to_vmem [thread:$0]  %s654_s0, 256, %s16_s10, [#allocation5], %s578_s19, %s578_s19, %s579_s20  }
  0x13   :  { %s580_s23 = smov [#allocation7]   ;;  %s527_s27 = scalar_lea.hbm %s655_s1, 512 }
  0x14   :  { %s27_s24 = sshll.u32 %s580_s23, 4  ;;  %p528_p8 = scmp.ne.s32.totalorder %s655_s1, %s527_s27  ;;  %s28_s24 = int_to_ptr.vmem [resolvable:$true] %s27_s24 }
  0x15   :  { %p531_p9 = scmp.lt.u32.totalorder %s527_s27, %s655_s1 }
  0x17   :  { %p533_p10 = pnand %p531_p9, %p528_p8 }
  0x19   :  { %536 = shalt.err (!%p533_p10)
}
  0x1a   :  { %s537_s4 = scalar_lea.vmem %s28_s24, 512  ;;  %p542_p12 = scmp.lt.s32.totalorder %s28_s24, %s28_s24 }
  0x1b   :  { %p538_p11 = scmp.ne.s32.totalorder %s28_s24, %s537_s4  ;;  %p543_p13 = scmp.lt.s32.totalorder %s537_s4, %s537_s4 }
  0x1d   :  { %p544_p0 = por %p543_p13, %p542_p12 }
  0x1f   :  { %p545_p1 = pnand %p544_p0, %p538_p11 }
  0x21   :  { %548 = shalt.err (!%p545_p1)
}
  0x22   :  { %33 = dma.hbm_to_vmem [thread:$0]  %s655_s1, 512, %s28_s24, [#allocation8], %s578_s19, %s578_s19, %s579_s20  }
  0x23   :  { %571 = dma.done.wait [#allocation5], 256  }
  0x24   :  { %572 = vsyncadd [#allocation5], 4294967040 }
  0x25   :  { %573 = dma.done.wait [#allocation8], 512  }
  0x26   :  { %574 = vsyncadd [#allocation8], 4294966784  ;;  %vm44_vm0 = vcmask 261120   ;;  %vm49_vm1 = vcmask 253952   ;;  %v581_v0 = vmov 0.0   ;;  %v51_v1 = vld [vmem:[#allocation4] sm:$0xff]  ;;  %v359_v36 = vlaneseq }
  0x27   :  { %50 = vst.msk [vmem:[#allocation3] sm:$0x1] %vm49_vm1, %v581_v0  ;;  %v52_v2 = vld [vmem:[#allocation4 + $0x8] sm:$0xff]  ;;  %71 = vxpose.xlu0.b32.start [1/2] (short) (narrow) %v51_v1, 32  ;;  %v55_v3 = vsel %vm44_vm0, %v51_v1, 0.0  ;;  %vm258_vm2 = vcmask 1040384  }
  0x28   :  { %45 = vst.msk [vmem:[#allocation2] sm:$0xff] %vm44_vm0, %v581_v0  ;;  %46 = vst.msk [vmem:[#allocation2 + $0x8] sm:$0xff] %vm44_vm0, %v581_v0  ;;  %v56_v4 = vsel %vm44_vm0, %v52_v2, 0.0  ;;  %v487_v5 = vpack.c.bf16 %v52_v2, %v51_v1  ;;  %vm103_vm3 = vcmask 130048   ;;  %vm245_vm4 = vcmask 7168   ;;  %v398_v47 = vld [vmem:[#allocation7 + $0x8] sm:$0xff] }
  0x29   :  { %47 = vst.msk [vmem:[#allocation2 + $0x10] sm:$0xff] %vm44_vm0, %v581_v0  ;;  %48 = vst.msk [vmem:[#allocation2 + $0x18] sm:$0xff] %vm44_vm0, %v581_v0  ;;  %v57_v6 = vadd.f32 %v56_v4, %v55_v3  ;;  %v360_v37 = vshrl.u32 %v359_v36, 7  ;;  %v365_v39 = vand.u32 127, %v359_v36  ;;  %v397_v51 = vld [vmem:[#allocation7] sm:$0xff]  ;;  %s582_s11 = smov [#allocation9]  }
  0x2a   :  { %488 = vmatprep.subr.bf16.mxu0 %v487_v5  ;;  %s439_s12 = sshll.u32 %s582_s11, 4  ;;  %vm431_vm9 = vcmask 0   ;;  %s440_s12 = int_to_ptr.vmem [resolvable:$true] %s439_s12 }
  0x2b   :  { %v58_v7 = vrot.slane %v57_v6, 4  ;;  %490 = vmatpush3.bf16.msra.mxu0 %v487_v5  ;;  %72 = vxpose.xlu0.b32.end [2/2] (short) (narrow) %v52_v2, 32  ;;  %v361_v38 = vadd.s32 8, %v360_v37  ;;  %vm366_vm6 = vcmp.eq.s32.totalorder %v360_v37, %v365_v39  ;;  %v362_v57 = vadd.s32 16, %v360_v37  ;;  %s549_s15 = scalar_lea.vmem %s440_s12, 16  ;;  %s553_s16 = scalar_lea.vmem %s440_s12, 32 }
  0x2c   :  { %v363_v58 = vadd.s32 24, %v360_v37  ;;  %p550_p2 = scmp.ne.s32.totalorder %s440_s12, %s549_s15  ;;  %p554_p3 = scmp.lt.s32.totalorder %s440_s12, %s440_s12 }
  0x2d   :  { %v59_v8 = vadd.f32 %v58_v7, %v57_v6  ;;  %vm367_vm5 = vcmp.eq.s32.totalorder %v361_v38, %v365_v39  ;;  %vm368_vm7 = vcmp.eq.s32.totalorder %v362_v57, %v365_v39  ;;  %p555_p4 = scmp.lt.s32.totalorder %s553_s16, %s549_s15 }
  0x2e   :  { %v53_v12 = vld [vmem:[#allocation3] sm:$0x1]  ;;  %vm369_vm8 = vcmp.eq.s32.totalorder %v363_v58, %v365_v39 }
  0x2f   :  { %v60_v9 = vrot.slane %v59_v8, 2  ;;  %v68_v24 = vld [vmem:[#allocation2 + $0x8] sm:$0xff]  ;;  %v67_v25 = vld [vmem:[#allocation2] sm:$0xff]  ;;  %p556_p5 = por %p555_p4, %p554_p3 }
  0x30   :  { %v70_v30 = vld [vmem:[#allocation2 + $0x18] sm:$0xff]  ;;  %v69_v31 = vld [vmem:[#allocation2 + $0x10] sm:$0xff] }
  0x31   :  { %v61_v10 = vadd.f32 %v60_v9, %v59_v8  ;;  %v399_v9 = vld [vmem:[#allocation7 + $0x10] sm:$0xff]  ;;  %p557_p6 = pnand %p556_p5, %p550_p2 }
  0x33   :  { %v62_v11 = vrot.slane %v61_v10, 1 }
  0x35   :  { %v63_v13 = vadd.f32 %v62_v11, %v61_v10  ;;  %v400_v10 = vld [vmem:[#allocation7 + $0x18] sm:$0xff] }
  0x37   :  { %v64_v14 = vadd.f32 %v63_v13, %v53_v12 }
  0x39   :  { %66 = vst.msk [vmem:[#allocation3] sm:$0x1] %vm49_vm1, %v64_v14 }
  0x40   :  { %v212_v15 = vld [vmem:[#allocation3] sm:$0x1] }
  0x41   :  { %213 = vxpose.xlu1.b32.start.end [1/1] (short) (narrow) %v212_v15, 32  ;;  %479 = vmatprep.subr.msk.mxu1 %vm258_vm2, %v212_v15 }
  0x42   :  { %480 = vmatpush3.msk.msra.mxu1 %vm258_vm2, %v212_v15 }
  0xa7   :  { %v87_v16 = vpop.trf.xlu0 }
  0xa8   :  { %473 = vmatprep.mubr.msk.f32.mxu0 %vm103_vm3, %v87_v16 }
  0xab   :  { %v88_v17 = vpop.trf.xlu0 }
  0xac   :  { %474 = vmatmul.mubr.msk.f32.vlgmr.msra.gmra.mrb[0].mxu0 %vm103_vm3, %v88_v17 }
  0xaf   :  { %v89_v18 = vpop.trf.xlu0 }
  0xb0   :  { %476 = vmatprep.mubr.msk.f32.mxu0 %vm103_vm3, %v89_v18 }
  0xb3   :  { %v90_v19 = vpop.trf.xlu0 }
  0xb4   :  { %477 = vmatmul.mubr.msk.f32.gmra.mrb[2].mxu0 %vm103_vm3, %v90_v19 }
  0xc1   :  { %v229_v20 = vpop.trf.xlu1 }
  0xc2   :  { %481 = vmatprep.mubr.msk.f32.mxu1 %vm245_vm4, %v229_v20 }
  0xc5   :  { %v230_v21 = vpop.trf.xlu1 }
  0xc6   :  { %482 = vmatmul.mubr.msk.f32.vlgmr.msra.gmra.mrb[0].mxu1 %vm245_vm4, %v230_v21 }
  0xc9   :  { %v231_v22 = vpop.trf.xlu1 }
  0xca   :  { %484 = vmatprep.mubr.msk.f32.mxu1 %vm245_vm4, %v231_v22 }
  0xcd   :  { %v232_v23 = vpop.trf.xlu1 }
  0xce   :  { %485 = vmatmul.mubr.msk.f32.gmra.mrb[2].mxu1 %vm245_vm4, %v232_v23 }
 0x17f   :  { %v475_v26 = vpop.f32.mrb[0].mxu0 }
 0x180   :  { %v202_v27 = vadd.f32 %v475_v26, %v68_v24  ;;  %v182_v28 = vpop.f32.mrb[1].mxu0 }
 0x181   :  { %v201_v29 = vadd.f32 %v182_v28, %v67_v25 }
 0x182   :  { %206 = vst.msk [vmem:[#allocation2 + $0x8] sm:$0xff] %vm44_vm0, %v202_v27 }
 0x183   :  { %205 = vst.msk [vmem:[#allocation2] sm:$0xff] %vm44_vm0, %v201_v29 }
 0x187   :  { %v478_v32 = vpop.f32.mrb[2].mxu0 }
 0x188   :  { %v204_v33 = vadd.f32 %v478_v32, %v70_v30  ;;  %v192_v34 = vpop.f32.mrb[3].mxu0 }
 0x189   :  { %v203_v35 = vadd.f32 %v192_v34, %v69_v31  ;;  %v348_v41 = vld [vmem:[#allocation2 + $0x8] sm:$0xff] }
 0x18a   :  { %208 = vst.msk [vmem:[#allocation2 + $0x18] sm:$0xff] %vm44_vm0, %v204_v33  ;;  %v347_v44 = vld [vmem:[#allocation2] sm:$0xff] }
 0x18b   :  { %207 = vst.msk [vmem:[#allocation2 + $0x10] sm:$0xff] %vm44_vm0, %v203_v35 }
 0x191   :  { %v350_v61 = vld [vmem:[#allocation2 + $0x18] sm:$0xff] }
 0x192   :  { %v349_v1 = vld [vmem:[#allocation2 + $0x10] sm:$0xff] }
 0x199   :  { %v483_v40 = vpop.f32.mrb[0].mxu1 }
 0x19a   :  { %v352_v42 = vmul.f32 0.0625, %v483_v40  ;;  %v328_v43 = vpop.f32.mrb[1].mxu1 }
 0x19b   :  { %v351_v45 = vmul.f32 0.0625, %v328_v43 }
 0x19c   :  { %v356_v46 = vsub.f32 %v348_v41, %v352_v42 }
 0x19d   :  { %v355_v48 = vsub.f32 %v347_v44, %v351_v45 }
 0x19e   :  { %v371_v49 = vsel %vm367_vm5, %v356_v46, 0.0  ;;  %v394_v50 = vmul.f32 %v356_v46, %v356_v46 }
 0x19f   :  { %v375_v52 = vsel %vm44_vm0, %v371_v49, 0.0  ;;  %v370_v53 = vsel %vm366_vm6, %v355_v48, 0.0  ;;  %v393_v54 = vmul.f32 %v355_v48, %v355_v48 }
 0x1a0   :  { %v402_v55 = vmul.f32 %v398_v47, %v394_v50  ;;  %v374_v56 = vsel %vm44_vm0, %v370_v53, 0.0 }
 0x1a1   :  { %v401_v59 = vmul.f32 %v397_v51, %v393_v54  ;;  %v486_v60 = vpop.f32.mrb[2].mxu1  ;;  %v376_v62 = vadd.f32 %v375_v52, %v374_v56 }
 0x1a2   :  { %v354_v63 = vmul.f32 0.0625, %v486_v60  ;;  %v338_v0 = vpop.f32.mrb[3].mxu1  ;;  %v406_v2 = vsel %vm44_vm0, %v402_v55, 0.0 }
 0x1a3   :  { %v353_v3 = vmul.f32 0.0625, %v338_v0  ;;  %v405_v4 = vsel %vm44_vm0, %v401_v59, 0.0 }
 0x1a4   :  { %v358_v5 = vsub.f32 %v350_v61, %v354_v63  ;;  %v407_v6 = vadd.f32 %v406_v2, %v405_v4 }
 0x1a5   :  { %v357_v7 = vsub.f32 %v349_v1, %v353_v3 }
 0x1a6   :  { %v396_v8 = vmul.f32 %v358_v5, %v358_v5  ;;  %v373_v13 = vsel %vm369_vm8, %v358_v5, 0.0 }
 0x1a7   :  { %v372_v11 = vsel %vm368_vm7, %v357_v7, 0.0  ;;  %v395_v12 = vmul.f32 %v357_v7, %v357_v7  ;;  %v379_v18 = vsel %vm44_vm0, %v373_v13, 0.0 }
 0x1a8   :  { %v377_v14 = vsel %vm44_vm0, %v372_v11, 0.0  ;;  %v404_v17 = vmul.f32 %v400_v10, %v396_v8 }
 0x1a9   :  { %v403_v15 = vmul.f32 %v399_v9, %v395_v12  ;;  %v378_v16 = vadd.f32 %v377_v14, %v376_v62 }
 0x1aa   :  { %v410_v22 = vsel %vm44_vm0, %v404_v17, 0.0 }
 0x1ab   :  { %v380_v19 = vadd.f32 %v379_v18, %v378_v16  ;;  %v408_v20 = vsel %vm44_vm0, %v403_v15, 0.0 }
 0x1ac   :  { %v409_v21 = vadd.f32 %v408_v20, %v407_v6 }
 0x1ad   :  { %381 = vadd.xlane.f32.xlu1 %v380_v19 }
 0x1ae   :  { %v411_v23 = vadd.f32 %v410_v22, %v409_v21 }
 0x1b0   :  { %412 = vadd.xlane.f32.xlu0 %v411_v23 }
 0x23a   :  { %v382_v24 = vpop.xlane.xlu1 %381 }
 0x23b   :  { %v383_v25 = vrot.slane %v382_v24, 4 }
 0x23d   :  { %v384_v26 = vadd.f32 %v383_v25, %v382_v24  ;;  %v413_v27 = vpop.xlane.xlu0 %412 }
 0x23e   :  { %v414_v28 = vrot.slane %v413_v27, 4 }
 0x23f   :  { %v385_v29 = vrot.slane %v384_v26, 2 }
 0x240   :  { %v415_v30 = vadd.f32 %v414_v28, %v413_v27 }
 0x241   :  { %v386_v31 = vadd.f32 %v385_v29, %v384_v26 }
 0x242   :  { %v416_v32 = vrot.slane %v415_v30, 2 }
 0x243   :  { %v387_v33 = vrot.slane %v386_v31, 1 }
 0x244   :  { %v417_v34 = vadd.f32 %v416_v32, %v415_v30 }
 0x245   :  { %v388_v35 = vadd.f32 %v387_v33, %v386_v31 }
 0x246   :  { %v418_v36 = vrot.slane %v417_v34, 1 }
 0x247   :  { %491 = vpush %v388_v35 }
 0x248   :  { %v419_v37 = vadd.f32 %v418_v36, %v417_v34 }
 0x24a   :  { %493 = vpush %v419_v37 }
 0x278   :  { %s492_s1 = spop %491 }
 0x279   :  { %s392_s6 = smul.f32 0.03125, %s492_s1 }
 0x27b   :  { %s424_s7 = smul.f32 %s392_s6, %s392_s6  ;;  %s494_s9 = spop %493 }
 0x27c   :  { %s423_s10 = smul.f32 0.03125, %s494_s9 }
 0x27d   :  { %s425_s8 = sadd.f32 1e-20, %s424_s7 }
 0x27f   :  { %v426_v38 = vstv %s425_s8 }
 0x280   :  { %503 = vrcp.f32 %v426_v38 }
 0x28a   :  { %v504_v39 = vpop.eup %503 }
 0x28b   :  { %495 = vpush %v504_v39 }
 0x2bc   :  { %s496_s13 = spop %495 }
 0x2bd   :  { %s429_s14 = smul.f32 %s496_s13, %s423_s10 }
 0x2bf   :  { %v430_v40 = vstv %s429_s14 }
 0x2c0   :  { %432 = vst.msk [vmem:[#allocation9] sm:$0x1] %vm431_vm9, %v430_v40 }
 0x2c1   :  { %560 = shalt.err (!%p557_p6)
}
 0x2c2   :  { %s561_s19 = scalar_lea.hbm %s656_s2, 16 }
 0x2c3   :  { %p562_p7 = scmp.ne.s32.totalorder %s656_s2, %s561_s19  ;;  %p565_p8 = scmp.lt.u32.totalorder %s561_s19, %s656_s2 }
 0x2c5   :  { %p567_p9 = pnand %p565_p8, %p562_p7 }
 0x2c7   :  { %570 = shalt.err (!%p567_p9)
}
 0x2c8   :  { %442 = dma.vmem_to_hbm [thread:$0]  %s440_s12, 16, %s656_s2, [#allocation6]  }
 0x2c9   :  { %575 = dma.done.wait [#allocation6], 16  }
 0x2ca   :  { %576 = vsyncadd [#allocation6], 4294967280 }
 0x2cb   :  { %446 = vsyncpa [#allocation5], 1 }
 0x2cc   :  { %447 = vsyncpa [#allocation8], 1 }
 0x2cd   :  { %448 = vsyncpa [#allocation6], 1 }

</bundles_post_ra>
